<compile_context>
chip_gen: v6e
topology: v6e:2x2x1
jax: 0.10.0
libtpu: 0.0.40
codegen_flags: <defaults>
</compile_context>

<pallas_src>
import functools
import math

import jax
import jax.numpy as jnp
from jax.experimental import pallas as pl
from jax.experimental.pallas import tpu as pltpu


# ---------------------------------------------------------------------------
# Tiling helpers
# ---------------------------------------------------------------------------
def _sublane_align(dtype):
    """Minimum sublane multiple for this dtype's packing."""
    return {4: 8, 2: 16, 1: 32}.get(jnp.dtype(dtype).itemsize, 8)


def _pick_tile(dim, preferred, align):
    """Largest `align`-aligned divisor of `dim` <= preferred; else full dim."""
    if dim <= preferred:
        return dim
    t = (preferred // align) * align
    while t >= align:
        if dim % t == 0:
            return t
        t -= align
    # TODO(synk): no aligned divisor found -> fall back to the full dimension.
    # A padded-grid (pl.cdiv) + masked-epilogue path would be needed for truly
    # awkward dims; not required for the shapes exercised here.
    return dim


# ---------------------------------------------------------------------------
# Linear projection kernel: y = x @ W^T + b   (PyTorch nn.Linear semantics)
# ---------------------------------------------------------------------------
def _linear_kernel(x_ref, w_ref, b_ref, o_ref, acc_ref):
    # grid = (M//tm, N//tn, K//tk); K (reduction) is the trailing "arbitrary" axis.
    @pl.when(pl.program_id(2) == 0)
    def _():
        acc_ref[...] = jnp.zeros_like(acc_ref)

    # Native-dtype operands on the MXU; f32 accumulation via preferred_element_type.
    acc_ref[...] += jnp.dot(
        x_ref[...], w_ref[...], preferred_element_type=jnp.float32
    )

    @pl.when(pl.program_id(2) == pl.num_programs(2) - 1)
    def _():
        o_ref[...] = (acc_ref[...] + b_ref[...].astype(jnp.float32)).astype(o_ref.dtype)


def linear(x, weight, bias, *, tm=512, tn=512, tk=512):
    """x: (..., in_f); weight: (out_f, in_f); bias: (out_f,) -> (..., out_f)."""
    *lead, in_f = x.shape
    out_f = weight.shape[0]
    x2d = x.reshape(-1, in_f)
    m = x2d.shape[0]

    w_t = weight.T              # (in_f, out_f): plain row-major matmul in-kernel
    b2d = bias.reshape(1, out_f)

    tm_ = _pick_tile(m, tm, _sublane_align(x.dtype))   # dtype-aware sublane align
    tn_ = _pick_tile(out_f, tn, 128)                   # lane-dense output
    tk_ = _pick_tile(in_f, tk, 128)
    grid = (m // tm_, out_f // tn_, in_f // tk_)

    out2d = pl.pallas_call(
        _linear_kernel,
        out_shape=jax.ShapeDtypeStruct((m, out_f), x.dtype),
        grid=grid,
        in_specs=[
            pl.BlockSpec((tm_, tk_), lambda i, j, k: (i, k)),
            pl.BlockSpec((tk_, tn_), lambda i, j, k: (k, j)),
            pl.BlockSpec((1, tn_), lambda i, j, k: (0, j)),
        ],
        out_specs=pl.BlockSpec((tm_, tn_), lambda i, j, k: (i, j)),
        scratch_shapes=[pltpu.VMEM((tm_, tn_), jnp.float32)],
        compiler_params=pltpu.CompilerParams(
            dimension_semantics=("parallel", "parallel", "arbitrary")
        ),
    )(x2d, w_t, b2d)

    return out2d.reshape(*lead, out_f)


# ---------------------------------------------------------------------------
# Flash-style scaled dot-product attention kernel
#   grid = (B, h, Sq//tq, Sk//tkv), Sk is the trailing reduction axis.
# ---------------------------------------------------------------------------
def _flash_attention_kernel(q_ref, k_ref, v_ref, bias_ref, o_ref,
                            m_sc, l_sc, acc_sc, *, scale):
    ki = pl.program_id(3)

    @pl.when(ki == 0)
    def _():
        m_sc[...] = jnp.full_like(m_sc, -jnp.inf)
        l_sc[...] = jnp.zeros_like(l_sc)
        acc_sc[...] = jnp.zeros_like(acc_sc)

    # Pre-scale q on the (tq, dk) tile (cheaper than scaling (tq, tkv) scores).
    q = q_ref[0, 0] * scale            # (tq, dk), native dtype
    k = k_ref[0, 0]                    # (tkv, dk)
    v = v_ref[0, 0]                    # (tkv, dk)

    # scores = q @ k^T, f32 accumulation on the MXU.
    s = jax.lax.dot_general(
        q, k, (((1,), (1,)), ((), ())), preferred_element_type=jnp.float32
    )
    s = s + bias_ref[0, 0].astype(jnp.float32)     # additive mask bias

    m_prev = m_sc[...]
    m_new = jnp.maximum(m_prev, jnp.max(s, axis=-1, keepdims=True))
    alpha = jnp.exp(m_prev - m_new)
    p = jnp.exp(s - m_new)

    l_sc[...] = alpha * l_sc[...] + jnp.sum(p, axis=-1, keepdims=True)
    acc_sc[...] = alpha * acc_sc[...] + jnp.dot(
        p.astype(v.dtype), v, preferred_element_type=jnp.float32
    )
    m_sc[...] = m_new

    @pl.when(ki == pl.num_programs(3) - 1)
    def _():
        # TODO(synk): dk < 128 makes this a masked (partial-lane) store;
        # a multi-head-per-step slab output would make it lane-dense.
        o_ref[0, 0] = (
            acc_sc[...] * pl.reciprocal(l_sc[...], approx=True)
        ).astype(o_ref.dtype)


def attention(q, k, v, bias, *, tq=128, tkv=256):
    """q: (B,h,Sq,dk), k/v: (B,h,Sk,dk), bias: (B,1,Sq,Sk) -> (B,h,Sq,dk)."""
    B, h, Sq, dk = q.shape
    Sk = k.shape[2]
    scale = 1.0 / math.sqrt(dk)

    tq_ = _pick_tile(Sq, tq, _sublane_align(q.dtype))
    tkv_ = _pick_tile(Sk, tkv, 128)     # lane dim of the bias block
    grid = (B, h, Sq // tq_, Sk // tkv_)

    kernel = functools.partial(_flash_attention_kernel, scale=scale)

    return pl.pallas_call(
        kernel,
        out_shape=jax.ShapeDtypeStruct((B, h, Sq, dk), q.dtype),
        grid=grid,
        in_specs=[
            pl.BlockSpec((1, 1, tq_, dk), lambda b, hd, qi, ki: (b, hd, qi, 0)),
            pl.BlockSpec((1, 1, tkv_, dk), lambda b, hd, qi, ki: (b, hd, ki, 0)),
            pl.BlockSpec((1, 1, tkv_, dk), lambda b, hd, qi, ki: (b, hd, ki, 0)),
            pl.BlockSpec((1, 1, tq_, tkv_), lambda b, hd, qi, ki: (b, 0, qi, ki)),
        ],
        out_specs=pl.BlockSpec((1, 1, tq_, dk), lambda b, hd, qi, ki: (b, hd, qi, 0)),
        scratch_shapes=[
            pltpu.VMEM((tq_, 1), jnp.float32),    # running max m
            pltpu.VMEM((tq_, 1), jnp.float32),    # running denom l
            pltpu.VMEM((tq_, dk), jnp.float32),   # output accumulator
        ],
        compiler_params=pltpu.CompilerParams(
            dimension_semantics=("parallel", "parallel", "parallel", "arbitrary")
        ),
    )(q, k, v, bias)


# ---------------------------------------------------------------------------
# Full MultiHeadAttentionBlock forward
# ---------------------------------------------------------------------------
def multi_head_attention_block(q, k, v, mask, params, h):
    d_model = q.shape[-1]
    assert d_model % h == 0, "d_model is not divisible by h"
    d_k = d_model // h

    query = linear(q, params["w_q"], params["b_q"])
    key = linear(k, params["w_k"], params["b_k"])
    value = linear(v, params["w_v"], params["b_v"])

    B, Sq, _ = query.shape
    Sk = key.shape[1]

    # (B, S, d_model) -> (B, h, S, d_k)
    # TODO(synk): these transposes (and the merge below) are still XLA HBM
    # passes; fusing the head index into the attention BlockSpecs requires a
    # 1-wide window in the sublane-tiled head dim and is left as future work.
    query = query.reshape(B, Sq, h, d_k).transpose(0, 2, 1, 3)
    key = key.reshape(B, Sk, h, d_k).transpose(0, 2, 1, 3)
    value = value.reshape(B, Sk, h, d_k).transpose(0, 2, 1, 3)

    # Additive mask bias in the compute dtype (no int32 mask DMA, no in-kernel select).
    if mask is None:
        bias = jnp.zeros((B, 1, Sq, Sk), dtype=query.dtype)
    else:
        mask_b = jnp.broadcast_to(mask, (B, 1, Sq, Sk))
        bias = jnp.where(
            mask_b == 0,
            jnp.asarray(-1e9, dtype=query.dtype),
            jnp.asarray(0.0, dtype=query.dtype),
        )

    x = attention(query, key, value, bias)  # (B, h, Sq, d_k)

    # TODO(synk): attention-score dropout is omitted (inference-mode forward);
    # the reference stores a float in self.dropout, which is not callable anyway.

    # (B, h, Sq, d_k) -> (B, Sq, d_model)
    x = x.transpose(0, 2, 1, 3).reshape(B, Sq, h * d_k)
    return linear(x, params["w_o"], params["b_o"])


# ---------------------------------------------------------------------------
# Pure-JAX reference (same math, XLA ops) for the correctness check
# ---------------------------------------------------------------------------
def _ref_forward(q, k, v, mask, params, h):
    d_model = q.shape[-1]
    d_k = d_model // h

    def lin(x, w, b):
        return x @ w.T + b

    query = lin(q, params["w_q"], params["b_q"])
    key = lin(k, params["w_k"], params["b_k"])
    value = lin(v, params["w_v"], params["b_v"])

    B, Sq, _ = query.shape
    Sk = key.shape[1]
    query = query.reshape(B, Sq, h, d_k).transpose(0, 2, 1, 3)
    key = key.reshape(B, Sk, h, d_k).transpose(0, 2, 1, 3)
    value = value.reshape(B, Sk, h, d_k).transpose(0, 2, 1, 3)

    scores = jnp.einsum("bhqd,bhkd->bhqk", query, key) / math.sqrt(d_k)
    if mask is not None:
        scores = jnp.where(mask == 0, -1e9, scores)
    scores = jax.nn.softmax(scores, axis=-1)
    x = jnp.einsum("bhqk,bhkd->bhqd", scores, value)
    x = x.transpose(0, 2, 1, 3).reshape(B, Sq, h * d_k)
    return lin(x, params["w_o"], params["b_o"])


if __name__ == "__main__":
    rng = jax.random.PRNGKey(0)
    batch, seq, d_model, h = 2, 8, 32, 4

    keys = jax.random.split(rng, 11)
    q = jax.random.normal(keys[0], (batch, seq, d_model), dtype=jnp.float32)
    k = jax.random.normal(keys[1], (batch, seq, d_model), dtype=jnp.float32)
    v = jax.random.normal(keys[2], (batch, seq, d_model), dtype=jnp.float32)

    def init_linear(kw, kb, out_f, in_f):
        bound = 1.0 / math.sqrt(in_f)
        w = jax.random.uniform(kw, (out_f, in_f), jnp.float32, -bound, bound)
        b = jax.random.uniform(kb, (out_f,), jnp.float32, -bound, bound)
        return w, b

    params = {}
    params["w_q"], params["b_q"] = init_linear(keys[3], keys[4], d_model, d_model)
    params["w_k"], params["b_k"] = init_linear(keys[5], keys[6], d_model, d_model)
    params["w_v"], params["b_v"] = init_linear(keys[7], keys[8], d_model, d_model)
    params["w_o"], params["b_o"] = init_linear(keys[9], keys[10], d_model, d_model)

    # Causal mask (1 = keep, 0 = masked), shape (batch, 1, seq, seq)
    causal = jnp.tril(jnp.ones((seq, seq), dtype=jnp.int32))
    mask = jnp.broadcast_to(causal, (batch, 1, seq, seq))

    out = multi_head_attention_block(q, k, v, mask, params, h)
    out = jax.block_until_ready(out)

    ref = _ref_forward(q, k, v, mask, params, h)
    assert out.shape == (batch, seq, d_model)
    assert jnp.allclose(out, ref, rtol=2e-3, atol=2e-3), "mismatch vs reference"

    print("KERNEL_OK")
</pallas_src>

<mosaic_0001>
module attributes {stable_mosaic.version = 11 : i64} {
  func.func @_linear_kernel(%arg0: i32, %arg1: i32, %arg2: i32, %arg3: memref<16x32xf32, #tpu.memory_space<vmem>>, %arg4: memref<32x32xf32, #tpu.memory_space<vmem>>, %arg5: memref<1x32xf32, #tpu.memory_space<vmem>>, %arg6: memref<16x32xf32, #tpu.memory_space<vmem>>, %arg7: memref<16x32xf32, #tpu.memory_space<vmem>>) attributes {dimension_semantics = [#tpu.dimension_semantics<parallel>, #tpu.dimension_semantics<parallel>, #tpu.dimension_semantics<arbitrary>], iteration_bounds = array<i64: 1, 1, 1>, scalar_prefetch = 0 : i64, scratch_operands = 1 : i64, tpu.core_type = #tpu.core_type<tc>, window_params = [{transform_indices = @transform_0, window_bounds = array<i64: 16, 32>}, {transform_indices = @transform_1, window_bounds = array<i64: 32, 32>}, {transform_indices = @transform_2, window_bounds = array<i64: 1, 32>}, {transform_indices = @transform_3, window_bounds = array<i64: 16, 32>}]} {
    %c0_i32 = arith.constant 0 : i32
    %0 = arith.cmpi eq, %arg2, %c0_i32 : i32
    %1 = arith.extui %0 : i1 to i32
    %c0_i32_0 = arith.constant 0 : i32
    %2 = arith.cmpi ne, %1, %c0_i32_0 : i32
    scf.if %2 {
      %cst_10 = arith.constant 0.000000e+00 : f32
      %12 = vector.broadcast %cst_10 : f32 to vector<16x32xf32>
      %c0_11 = arith.constant 0 : index
      %c0_12 = arith.constant 0 : index
      %13 = vector.load %arg7[%c0_11, %c0_12] : memref<16x32xf32, #tpu.memory_space<vmem>>, vector<16x32xf32>
      tpu.vector_store %arg7[%c0_11, %c0_12], %12 {strides = array<i32>} : memref<16x32xf32, #tpu.memory_space<vmem>>, vector<16x32xf32>,
    } else {
    }
    %c0 = arith.constant 0 : index
    %c0_1 = arith.constant 0 : index
    %3 = vector.load %arg7[%c0, %c0_1] : memref<16x32xf32, #tpu.memory_space<vmem>>, vector<16x32xf32>
    %c0_2 = arith.constant 0 : index
    %c0_3 = arith.constant 0 : index
    %4 = vector.load %arg3[%c0_2, %c0_3] : memref<16x32xf32, #tpu.memory_space<vmem>>, vector<16x32xf32>
    %c0_4 = arith.constant 0 : index
    %c0_5 = arith.constant 0 : index
    %5 = vector.load %arg4[%c0_4, %c0_5] : memref<32x32xf32, #tpu.memory_space<vmem>>, vector<32x32xf32>
    %cst = arith.constant dense<0.000000e+00> : vector<16x32xf32>
    %6 = tpu.matmul %4, %5, %cst {dimension_numbers = #tpu.dot_dimension_numbers<[1], [0], [0], [1], [0, 0, 1, 1], [], []>} : vector<16x32xf32>, vector<32x32xf32>, vector<16x32xf32> -> vector<16x32xf32>
    %7 = arith.addf %3, %6 : vector<16x32xf32>
    %c0_6 = arith.constant 0 : index
    %c0_7 = arith.constant 0 : index
    %8 = vector.load %arg7[%c0_6, %c0_7] : memref<16x32xf32, #tpu.memory_space<vmem>>, vector<16x32xf32>
    tpu.vector_store %arg7[%c0_6, %c0_7], %7 {strides = array<i32>} : memref<16x32xf32, #tpu.memory_space<vmem>>, vector<16x32xf32>,
    %c0_i32_8 = arith.constant 0 : i32
    %9 = arith.cmpi eq, %arg2, %c0_i32_8 : i32
    %10 = arith.extui %9 : i1 to i32
    %c0_i32_9 = arith.constant 0 : i32
    %11 = arith.cmpi ne, %10, %c0_i32_9 : i32
    scf.if %11 {
      %c0_10 = arith.constant 0 : index
      %c0_11 = arith.constant 0 : index
      %12 = vector.load %arg7[%c0_10, %c0_11] : memref<16x32xf32, #tpu.memory_space<vmem>>, vector<16x32xf32>
      %c0_12 = arith.constant 0 : index
      %c0_13 = arith.constant 0 : index
      %13 = vector.load %arg5[%c0_12, %c0_13] : memref<1x32xf32, #tpu.memory_space<vmem>>, vector<1x32xf32>
      %14 = vector.broadcast %13 : vector<1x32xf32> to vector<16x32xf32>
      %15 = arith.addf %12, %14 : vector<16x32xf32>
      %c0_14 = arith.constant 0 : index
      %c0_15 = arith.constant 0 : index
      %16 = vector.load %arg6[%c0_14, %c0_15] : memref<16x32xf32, #tpu.memory_space<vmem>>, vector<16x32xf32>
      tpu.vector_store %arg6[%c0_14, %c0_15], %15 {strides = array<i32>} : memref<16x32xf32, #tpu.memory_space<vmem>>, vector<16x32xf32>,
    } else {
    }
    return
  }
  func.func @transform_0(%arg0: i32, %arg1: i32, %arg2: i32) -> (i32, i32) {
    %c0_i32 = arith.constant 0 : i32
    return %arg0, %arg2 : i32, i32
  }
  func.func @transform_1(%arg0: i32, %arg1: i32, %arg2: i32) -> (i32, i32) {
    %c0_i32 = arith.constant 0 : i32
    return %arg2, %arg1 : i32, i32
  }
  func.func @transform_2(%arg0: i32, %arg1: i32, %arg2: i32) -> (i32, i32) {
    %c0_i32 = arith.constant 0 : i32
    %c0_i32_0 = arith.constant 0 : i32
    return %c0_i32, %arg1 : i32, i32
  }
  func.func @transform_3(%arg0: i32, %arg1: i32, %arg2: i32) -> (i32, i32) {
    %c0_i32 = arith.constant 0 : i32
    return %arg0, %arg1 : i32, i32
  }
}

</mosaic_0001>

<bundles_post_ra>
// kernel: tpu_custom_call.1
= control target key start
LH: loop header
LB: loop body
LE: loop exit
PB: predicated region body
PF: predicated region fallthrough
CT: control target
= control target key end

     0   :  { %8 = vsyncpa [#allocation4], 0  ;;  %s325_s0 = inlined_call_operand.hbm [shape: f32[16,32], index: 0, kind: input, shape index: {}]   ;;  %s326_s1 = inlined_call_operand.hbm [shape: f32[32,32], index: 1, kind: input, shape index: {}]   ;;  %s327_s2 = inlined_call_operand.vmem [shape: f32[1,32], index: 2, kind: input, shape index: {}]   ;;  %s328_s3 = inlined_call_operand.hbm [shape: f32[16,32], index: 3, kind: output, shape index: {}]  }
   0x1   :  { %9 = vsyncpa [#allocation7], 0 }
   0x2   :  { %10 = vsyncpa [#allocation5], 0  ;;  %s270_s12 = smov [#allocation3]  }
   0x3   :  { %s16_s13 = sshll.u32 %s270_s12, 4  ;;  %s17_s13 = int_to_ptr.vmem [resolvable:$true] %s16_s13 }
   0x4   :  { %s212_s14 = scalar_lea.vmem %s17_s13, 256  ;;  %p217_p1 = scmp.lt.s32.totalorder %s17_s13, %s17_s13 }
   0x5   :  { %p213_p0 = scmp.ne.s32.totalorder %s17_s13, %s212_s14  ;;  %p218_p2 = scmp.lt.s32.totalorder %s212_s14, %s212_s14 }
   0x7   :  { %p219_p3 = por %p218_p2, %p217_p1 }
   0x9   :  { %p220_p4 = pnand %p219_p3, %p213_p0 }
   0xb   :  { %223 = shalt.err (!%p220_p4)
}
   0xc   :  { %s271_s15 = smov 128   ;;  %s272_s16 = smov 8  }
   0xd   :  { %22 = dma.hbm_to_vmem [thread:$0]  %s325_s0, 256, %s17_s13, [#allocation4], %s271_s15, %s271_s15, %s272_s16  }
   0xe   :  { %s273_s19 = smov [#allocation6]  }
   0xf   :  { %s28_s20 = sshll.u32 %s273_s19, 4  ;;  %s29_s20 = int_to_ptr.vmem [resolvable:$true] %s28_s20 }
  0x10   :  { %s232_s21 = scalar_lea.vmem %s29_s20, 512  ;;  %p237_p6 = scmp.lt.s32.totalorder %s29_s20, %s29_s20 }
  0x11   :  { %p233_p5 = scmp.ne.s32.totalorder %s29_s20, %s232_s21  ;;  %p238_p7 = scmp.lt.s32.totalorder %s232_s21, %s232_s21 }
  0x13   :  { %p239_p8 = por %p238_p7, %p237_p6 }
  0x15   :  { %p240_p9 = pnand %p239_p8, %p233_p5 }
  0x17   :  { %243 = shalt.err (!%p240_p9)
}
  0x18   :  { %34 = dma.hbm_to_vmem [thread:$0]  %s326_s1, 512, %s29_s20, [#allocation7], %s271_s15, %s271_s15, %s272_s16  }
  0x19   :  { %264 = dma.done.wait [#allocation4], 256  }
  0x1a   :  { %265 = vsyncadd [#allocation4], 4294967040 }
  0x1b   :  { %266 = dma.done.wait [#allocation7], 512  }
  0x1c   :  { %267 = vsyncadd [#allocation7], 4294966784  ;;  %vm47_vm0 = vcmask 261120   ;;  %v274_v0 = vmov 0.0   ;;  %v57_v1 = vld [vmem:[#allocation6 + $0x18] sm:$0xff]  ;;  %v56_v2 = vld [vmem:[#allocation6 + $0x10] sm:$0xff] }
  0x1d   :  { %49 = vst.msk [vmem:[#allocation2 + $0x8] sm:$0xff] %vm47_vm0, %v274_v0  ;;  %48 = vst.msk [vmem:[#allocation2] sm:$0xff] %vm47_vm0, %v274_v0  ;;  %187 = vmatprep.subr.mxu0 %v57_v1  ;;  %v52_v3 = vld [vmem:[#allocation3] sm:$0xff]  ;;  %v55_v4 = vld [vmem:[#allocation6 + $0x8] sm:$0xff]  ;;  %s275_s24 = smov [#allocation8]  }
  0x1e   :  { %188 = vmatpush3.msra.mxu0 %v57_v1  ;;  %195 = vmatprep.mubr.msk.f32.mxu0 %vm47_vm0, %v52_v3  ;;  %v54_v5 = vld [vmem:[#allocation6] sm:$0xff]  ;;  %v53_v6 = vld [vmem:[#allocation3 + $0x8] sm:$0xff]  ;;  %s165_s25 = sshll.u32 %s275_s24, 4  ;;  %s166_s25 = int_to_ptr.vmem [resolvable:$true] %s165_s25 }
  0x1f   :  { %189 = vmatprep.subr.mxu0 %v56_v2  ;;  %v180_v13 = vld [vmem:[%s327_s2] ss:$0 sm:$0xff]  ;;  %s244_s26 = scalar_lea.vmem %s166_s25, 256  ;;  %p249_p11 = scmp.lt.s32.totalorder %s166_s25, %s166_s25 }
  0x20   :  { %190 = vmatpush3.msra.mxu0 %v56_v2  ;;  %p245_p10 = scmp.ne.s32.totalorder %s166_s25, %s244_s26  ;;  %p250_p12 = scmp.lt.s32.totalorder %s244_s26, %s244_s26 }
  0x21   :  { %191 = vmatprep.subr.mxu0 %v55_v4 }
  0x22   :  { %192 = vmatpush3.msra.mxu0 %v55_v4  ;;  %p251_p13 = por %p250_p12, %p249_p11 }
  0x23   :  { %193 = vmatprep.subr.mxu0 %v54_v5 }
  0x24   :  { %194 = vmatpush3.msra.mxu0 %v54_v5  ;;  %v51_v7 = vld [vmem:[#allocation2 + $0x8] sm:$0xff]  ;;  %v50_v9 = vld [vmem:[#allocation2] sm:$0xff]  ;;  %p252_p0 = pnand %p251_p13, %p245_p10 }
  0x25   :  { %196 = vmatmul.mubr.msk.f32.vlgmr.msra.gmra.mxu0 %vm47_vm0, %v53_v6 }
  0xe5   :  { %v197_v8 = vpop.f32.mrf.mxu0 }
  0xe6   :  { %v141_v10 = vadd.f32 %v197_v8, %v51_v7 }
  0xe7   :  { %v131_v11 = vpop.f32.mrf.mxu0 }
  0xe8   :  { %143 = vst.msk [vmem:[#allocation2 + $0x8] sm:$0xff] %vm47_vm0, %v141_v10  ;;  %v140_v12 = vadd.f32 %v131_v11, %v50_v9 }
  0xea   :  { %142 = vst.msk [vmem:[#allocation2] sm:$0xff] %vm47_vm0, %v140_v12 }
  0xef   :  { %v148_v14 = vld [vmem:[#allocation2 + $0x8] sm:$0xff] }
  0xf0   :  { %v157_v15 = vadd.f32 %v180_v13, %v148_v14 }
  0xf1   :  { %v147_v16 = vld [vmem:[#allocation2] sm:$0xff] }
  0xf2   :  { %v156_v17 = vadd.f32 %v180_v13, %v147_v16  ;;  %159 = vst.msk [vmem:[#allocation8 + $0x8] sm:$0xff] %vm47_vm0, %v157_v15 }
  0xf4   :  { %158 = vst.msk [vmem:[#allocation8] sm:$0xff] %vm47_vm0, %v156_v17 }
  0xf5   :  { %255 = shalt.err (!%p252_p0)
}
  0xf6   :  { %171 = dma.vmem_to_hbm [thread:$0]  %s166_s25, 256, %s328_s3, [#allocation5], %s271_s15, %s271_s15, %s272_s16  }
  0xf7   :  { %268 = dma.done.wait [#allocation5], 256  }
  0xf8   :  { %269 = vsyncadd [#allocation5], 4294967040 }
  0xf9   :  { %175 = vsyncpa [#allocation4], 1 }
  0xfa   :  { %176 = vsyncpa [#allocation7], 1 }
  0xfb   :  { %177 = vsyncpa [#allocation5], 1 }

</bundles_post_ra>
